<compile_context>
chip_gen: v5e
topology: v5e:2x2
jax: 0.10.0
libtpu: 0.0.40
codegen_flags: <defaults>
</compile_context>

<pallas_src>
import functools
import math

import jax
import jax.numpy as jnp
from jax import lax
from jax.experimental import pallas as pl
from jax.experimental.pallas import tpu as pltpu

_NEG_BIG = -1e30  # finite "−inf" so m_prev − m_new can never produce NaN


def _round_up(n, m):
    return ((n + m - 1) // m) * m


# --------------------------- Pass 1: fused QKV projection ---------------------------------
def _qkv_proj_kernel(x_ref, w_ref, q_ref, k_ref, v_ref, *, scale, d_out_p):
    """[q|k|v] = x_tile @ [Wq|Wk|Wv] in one MXU pass; softmax scale folded into q."""
    qkv = jnp.dot(x_ref[...], w_ref[...], preferred_element_type=jnp.float32)
    q_ref[...] = (qkv[:, 0 * d_out_p:1 * d_out_p] * scale).astype(q_ref.dtype)
    k_ref[...] = qkv[:, 1 * d_out_p:2 * d_out_p].astype(k_ref.dtype)
    v_ref[...] = qkv[:, 2 * d_out_p:3 * d_out_p].astype(v_ref.dtype)


# --------------------------- Pass 2: flash attention over q/k/v ---------------------------
def _flash_attn_kernel(q_ref, k_ref, v_ref, o_ref, m_scr, l_scr, acc_scr,
                       *, kv_valid_len, tk, mask_needed, approx_reciprocal):
    """Grid = (query tiles [parallel], kv tiles [arbitrary, reduction])."""
    j = pl.program_id(1)

    @pl.when(j == 0)
    def _init():
        m_scr[...] = jnp.full(m_scr.shape, _NEG_BIG, jnp.float32)
        l_scr[...] = jnp.zeros(l_scr.shape, jnp.float32)
        acc_scr[...] = jnp.zeros(acc_scr.shape, jnp.float32)

    # scores = (q*scale) @ k.T — contract on d_out without an explicit transpose.
    s = lax.dot_general(q_ref[...], k_ref[...], (((1,), (1,)), ((), ())),
                        preferred_element_type=jnp.float32)            # (tq, tk) f32

    if mask_needed:  # compiled in only when seq was padded (seq_p != seq)
        col = j * tk + lax.broadcasted_iota(jnp.int32, s.shape, 1)
        s = jnp.where(col < kv_valid_len, s, _NEG_BIG)

    # Online (flash) softmax update; running stats in f32.
    m_prev = m_scr[...]
    m_new = jnp.maximum(m_prev, jnp.max(s, axis=-1, keepdims=True))
    alpha = jnp.exp(m_prev - m_new)
    p = jnp.exp(s - m_new)
    l_scr[...] = alpha * l_scr[...] + jnp.sum(p, axis=-1, keepdims=True)
    acc_scr[...] = alpha * acc_scr[...] + jnp.dot(
        p.astype(v_ref.dtype), v_ref[...], preferred_element_type=jnp.float32)
    m_scr[...] = m_new

    @pl.when(j == pl.num_programs(1) - 1)
    def _finalize():
        # Normalize once on the (tq, d_out) accumulator, not per (tq, tk) tile.
        inv_l = pl.reciprocal(l_scr[...], approx=approx_reciprocal)
        o_ref[...] = (acc_scr[...] * inv_l).astype(o_ref.dtype)


# --------------------------------------- Wrapper ------------------------------------------
def self_attention_v2(x, wq, wk, wv, *, tq=256, tk=512, tp=256,
                      compute_dtype=jnp.bfloat16, approx_reciprocal=None,
                      vmem_limit_bytes=None):
    """x: (seq, d_in); wq/wk/wv: (d_in, d_out). Returns (seq, d_out) float32."""
    seq, d_in = x.shape
    d_out = wq.shape[-1]
    assert wq.shape == (d_in, d_out) and wk.shape == (d_in, d_out) and wv.shape == (d_in, d_out)
    cdt = jnp.dtype(compute_dtype)
    if approx_reciprocal is None:
        # Exact 1/x for the f32-exact path; EUP approx reciprocal for the bf16 fast path.
        approx_reciprocal = (cdt != jnp.dtype(jnp.float32))
    scale = 1.0 / math.sqrt(d_out)   # uses the *original* d_out, as in the PyTorch module

    # Lane-dense padding; tiles clamped to the 128-padded sequence so tiny problems stay tiny.
    d_in_p = _round_up(d_in, 128)
    d_out_p = _round_up(d_out, 128)
    seq128 = _round_up(seq, 128)
    tq_e, tk_e, tp_e = (min(t, seq128) for t in (tq, tk, tp))
    seq_p = _round_up(seq, math.lcm(tq_e, tk_e, tp_e))
    n_q, n_kv = seq_p // tq_e, seq_p // tk_e
    mask_needed = seq_p != seq
    itemsize = cdt.itemsize

    # Padded inputs: x once, fused weight [Wq | Wk | Wv] once.
    x_p = jnp.zeros((seq_p, d_in_p), cdt).at[:seq, :d_in].set(x.astype(cdt))
    w_qkv = jnp.zeros((d_in_p, 3 * d_out_p), cdt)
    w_qkv = w_qkv.at[:d_in, 0 * d_out_p:0 * d_out_p + d_out].set(wq.astype(cdt))
    w_qkv = w_qkv.at[:d_in, 1 * d_out_p:1 * d_out_p + d_out].set(wk.astype(cdt))
    w_qkv = w_qkv.at[:d_in, 2 * d_out_p:2 * d_out_p + d_out].set(wv.astype(cdt))

    # Explicit VMEM budget (double-buffered pipeline blocks + scratch + score intermediate),
    # so v7x (64 MiB) never OOMs and v5e/v6e get a limit that actually fits the working set.
    proj_fp = (2 * (tp_e * d_in_p + d_in_p * 3 * d_out_p + 3 * tp_e * d_out_p) * itemsize
               + tp_e * 3 * d_out_p * 4)
    flash_fp = (2 * (tq_e + 2 * tk_e) * d_out_p * itemsize     # q + k + v blocks, 2 buffers
                + 2 * tq_e * d_out_p * 4                       # f32 output block, 2 buffers
                + (tq_e * d_out_p + 2 * tq_e) * 4              # acc + m + l scratch
                + tq_e * tk_e * 4)                             # (tq, tk) f32 score tile
    if vmem_limit_bytes is None:
        vmem_limit_bytes = int(min(100 << 20, max(32 << 20, 2 * max(proj_fp, flash_fp))))

    # ---- Pass 1: projection (x and W read from HBM exactly once) ----
    proj_cost = pl.CostEstimate(
        flops=2 * seq_p * d_in_p * 3 * d_out_p,
        transcendentals=0,
        bytes_accessed=(seq_p * d_in_p + d_in_p * 3 * d_out_p + 3 * seq_p * d_out_p) * itemsize)

    q, k, v = pl.pallas_call(
        functools.partial(_qkv_proj_kernel, scale=scale, d_out_p=d_out_p),
        out_shape=tuple(jax.ShapeDtypeStruct((seq_p, d_out_p), cdt) for _ in range(3)),
        grid_spec=pltpu.PrefetchScalarGridSpec(
            num_scalar_prefetch=0,
            grid=(seq_p // tp_e,),
            in_specs=[pl.BlockSpec((tp_e, d_in_p), lambda i: (i, 0)),
                      pl.BlockSpec((d_in_p, 3 * d_out_p), lambda i: (0, 0))],
            out_specs=tuple(pl.BlockSpec((tp_e, d_out_p), lambda i: (i, 0)) for _ in range(3))),
        compiler_params=pltpu.CompilerParams(
            dimension_semantics=("parallel",),
            vmem_limit_bytes=vmem_limit_bytes),
        cost_estimate=proj_cost,
    )(x_p, w_qkv)

    # ---- Pass 2: flash attention over pre-projected q/k/v ----
    flash_cost = pl.CostEstimate(
        flops=4 * seq_p * seq_p * d_out_p,                       # QK^T + PV
        transcendentals=seq_p * seq_p + n_kv * seq_p,            # exp(p) + exp(alpha)
        bytes_accessed=(seq_p * d_out_p * itemsize                # q read once
                        + 2 * n_q * seq_p * d_out_p * itemsize    # k, v streamed per q tile
                        + seq_p * d_out_p * 4))                   # f32 output

    out_p = pl.pallas_call(
        functools.partial(_flash_attn_kernel, kv_valid_len=seq, tk=tk_e,
                          mask_needed=mask_needed, approx_reciprocal=approx_reciprocal),
        out_shape=jax.ShapeDtypeStruct((seq_p, d_out_p), jnp.float32),
        grid_spec=pltpu.PrefetchScalarGridSpec(
            num_scalar_prefetch=0,
            grid=(n_q, n_kv),
            in_specs=[pl.BlockSpec((tq_e, d_out_p), lambda i, j: (i, 0)),   # q tile
                      pl.BlockSpec((tk_e, d_out_p), lambda i, j: (j, 0)),   # k tile
                      pl.BlockSpec((tk_e, d_out_p), lambda i, j: (j, 0))],  # v tile
            out_specs=pl.BlockSpec((tq_e, d_out_p), lambda i, j: (i, 0)),
            scratch_shapes=[pltpu.VMEM((tq_e, 1), jnp.float32),        # running max m
                            pltpu.VMEM((tq_e, 1), jnp.float32),        # running sum l
                            pltpu.VMEM((tq_e, d_out_p), jnp.float32)]),  # unnormalized acc
        compiler_params=pltpu.CompilerParams(
            dimension_semantics=("parallel", "arbitrary"),
            vmem_limit_bytes=vmem_limit_bytes),
        cost_estimate=flash_cost,
    )(q, k, v)

    return out_p[:seq, :d_out]


def self_attention_v2_ref(x, wq, wk, wv):
    q = x @ wq
    k = x @ wk
    v = x @ wv
    w = jax.nn.softmax((q @ k.T) / jnp.sqrt(jnp.float32(wq.shape[-1])), axis=-1)
    return w @ v


if __name__ == "__main__":
    # --- Case 1: the book's toy example (seq=6, d_in=3, d_out=2) ---
    d_in, d_out = 3, 2
    x = jnp.array(
        [[0.43, 0.15, 0.89],
         [0.55, 0.87, 0.66],
         [0.57, 0.85, 0.64],
         [0.22, 0.58, 0.33],
         [0.77, 0.25, 0.10],
         [0.05, 0.80, 0.55]], dtype=jnp.float32)

    key = jax.random.PRNGKey(0)
    kq, kk, kvk, k2 = jax.random.split(key, 4)
    # Deterministic synthetic weights (nn.Linear(d_in, d_out, bias=False)), stored (d_in, d_out).
    wq = jax.random.uniform(kq, (d_in, d_out), dtype=jnp.float32)
    wk = jax.random.uniform(kk, (d_in, d_out), dtype=jnp.float32)
    wv = jax.random.uniform(kvk, (d_in, d_out), dtype=jnp.float32)
    ref = self_attention_v2_ref(x, wq, wk, wv)

    # Exact f32 path.
    out_f32 = jax.block_until_ready(
        self_attention_v2(x, wq, wk, wv, compute_dtype=jnp.float32))
    assert out_f32.shape == (x.shape[0], d_out)
    assert jnp.allclose(out_f32, ref, atol=1e-5, rtol=1e-5), (out_f32, ref)

    # Default bf16 MXU-operand fast path (f32 accumulation, f32 softmax stats).
    out_bf16 = jax.block_until_ready(self_attention_v2(x, wq, wk, wv))
    assert jnp.allclose(out_bf16, ref, atol=2e-2, rtol=2e-2), \
        float(jnp.max(jnp.abs(out_bf16 - ref)))

    # --- Case 2: larger multi-tile-capable case exercising the two-pass pipeline with the
    #     default bf16 operands + approx EUP reciprocal. ---
    seq2, d_in2, d_out2 = 256, 64, 64
    ka, kb, kc, kd = jax.random.split(k2, 4)
    x2 = jax.random.normal(ka, (seq2, d_in2), dtype=jnp.float32)
    lim = 1.0 / math.sqrt(d_in2)
    wq2 = jax.random.uniform(kb, (d_in2, d_out2), jnp.float32, -lim, lim)
    wk2 = jax.random.uniform(kc, (d_in2, d_out2), jnp.float32, -lim, lim)
    wv2 = jax.random.uniform(kd, (d_in2, d_out2), jnp.float32, -lim, lim)

    out2 = jax.block_until_ready(self_attention_v2(x2, wq2, wk2, wv2))
    ref2 = self_attention_v2_ref(x2, wq2, wk2, wv2)
    assert out2.shape == (seq2, d_out2)
    assert jnp.allclose(out2, ref2, atol=2e-2, rtol=2e-2), \
        float(jnp.max(jnp.abs(out2 - ref2)))

    print("KERNEL_OK")
</pallas_src>

<mosaic_0001>
module attributes {stable_mosaic.version = 11 : i64} {
  func.func @_qkv_proj_kernel(%arg0: i32, %arg1: memref<128x128xf32, #tpu.memory_space<vmem>>, %arg2: memref<128x384xf32, #tpu.memory_space<vmem>>, %arg3: memref<128x128xf32, #tpu.memory_space<vmem>>, %arg4: memref<128x128xf32, #tpu.memory_space<vmem>>, %arg5: memref<128x128xf32, #tpu.memory_space<vmem>>) attributes {dimension_semantics = [#tpu.dimension_semantics<parallel>], iteration_bounds = array<i64: 1>, scalar_prefetch = 0 : i64, scratch_operands = 0 : i64, tpu.core_type = #tpu.core_type<tc>, window_params = [{transform_indices = @transform_0, window_bounds = array<i64: 128, 128>}, {pipeline_mode = #tpu.pipeline_mode<synchronous>, transform_indices = @transform_1, window_bounds = array<i64: 128, 384>}, {transform_indices = @transform_2, window_bounds = array<i64: 128, 128>}, {transform_indices = @transform_3, window_bounds = array<i64: 128, 128>}, {transform_indices = @transform_4, window_bounds = array<i64: 128, 128>}]} {
    %c0 = arith.constant 0 : index
    %c0_0 = arith.constant 0 : index
    %0 = vector.load %arg1[%c0, %c0_0] : memref<128x128xf32, #tpu.memory_space<vmem>>, vector<128x128xf32>
    %c0_1 = arith.constant 0 : index
    %c0_2 = arith.constant 0 : index
    %1 = vector.load %arg2[%c0_1, %c0_2] : memref<128x384xf32, #tpu.memory_space<vmem>>, vector<128x384xf32>
    %cst = arith.constant dense<0.000000e+00> : vector<128x384xf32>
    %2 = tpu.matmul %0, %1, %cst {dimension_numbers = #tpu.dot_dimension_numbers<[1], [0], [0], [1], [0, 0, 1, 1], [], []>} : vector<128x128xf32>, vector<128x384xf32>, vector<128x384xf32> -> vector<128x384xf32>
    %3 = vector.extract_strided_slice %2 {offsets = [0, 0], sizes = [128, 128], strides = [1, 1]} : vector<128x384xf32> to vector<128x128xf32>
    %cst_3 = arith.constant 0.707106769 : f32
    %4 = vector.broadcast %cst_3 : f32 to vector<128x128xf32>
    %5 = arith.mulf %3, %4 : vector<128x128xf32>
    %c0_4 = arith.constant 0 : index
    %c0_5 = arith.constant 0 : index
    %6 = vector.load %arg3[%c0_4, %c0_5] : memref<128x128xf32, #tpu.memory_space<vmem>>, vector<128x128xf32>
    tpu.vector_store %arg3[%c0_4, %c0_5], %5 {strides = array<i32>} : memref<128x128xf32, #tpu.memory_space<vmem>>, vector<128x128xf32>,
    %7 = vector.extract_strided_slice %2 {offsets = [0, 128], sizes = [128, 128], strides = [1, 1]} : vector<128x384xf32> to vector<128x128xf32>
    %c0_6 = arith.constant 0 : index
    %c0_7 = arith.constant 0 : index
    %8 = vector.load %arg4[%c0_6, %c0_7] : memref<128x128xf32, #tpu.memory_space<vmem>>, vector<128x128xf32>
    tpu.vector_store %arg4[%c0_6, %c0_7], %7 {strides = array<i32>} : memref<128x128xf32, #tpu.memory_space<vmem>>, vector<128x128xf32>,
    %9 = vector.extract_strided_slice %2 {offsets = [0, 256], sizes = [128, 128], strides = [1, 1]} : vector<128x384xf32> to vector<128x128xf32>
    %c0_8 = arith.constant 0 : index
    %c0_9 = arith.constant 0 : index
    %10 = vector.load %arg5[%c0_8, %c0_9] : memref<128x128xf32, #tpu.memory_space<vmem>>, vector<128x128xf32>
    tpu.vector_store %arg5[%c0_8, %c0_9], %9 {strides = array<i32>} : memref<128x128xf32, #tpu.memory_space<vmem>>, vector<128x128xf32>,
    return
  }
  func.func @transform_0(%arg0: i32) -> (i32, i32) {
    %c0_i32 = arith.constant 0 : i32
    %c0_i32_0 = arith.constant 0 : i32
    return %arg0, %c0_i32 : i32, i32
  }
  func.func @transform_1(%arg0: i32) -> (i32, i32) {
    %c0_i32 = arith.constant 0 : i32
    %c0_i32_0 = arith.constant 0 : i32
    %c0_i32_1 = arith.constant 0 : i32
    return %c0_i32, %c0_i32_0 : i32, i32
  }
  func.func @transform_2(%arg0: i32) -> (i32, i32) {
    %c0_i32 = arith.constant 0 : i32
    %c0_i32_0 = arith.constant 0 : i32
    return %arg0, %c0_i32 : i32, i32
  }
  func.func @transform_3(%arg0: i32) -> (i32, i32) {
    %c0_i32 = arith.constant 0 : i32
    %c0_i32_0 = arith.constant 0 : i32
    return %arg0, %c0_i32 : i32, i32
  }
  func.func @transform_4(%arg0: i32) -> (i32, i32) {
    %c0_i32 = arith.constant 0 : i32
    %c0_i32_0 = arith.constant 0 : i32
    return %arg0, %c0_i32 : i32, i32
  }
}

</mosaic_0001>

<bundles_post_ra>
// kernel: tpu_custom_call.1
= control target key start
LH: loop header
LB: loop body
LE: loop exit
PB: predicated region body
PF: predicated region fallthrough
CT: control target
= control target key end

     0   :  { %10 = vsyncpa [#allocation3], 0  ;;  %s800_s0 = inlined_call_operand.hbm [shape: f32[128,128], index: 0, kind: input, shape index: {}]   ;;  %s801_s1 = inlined_call_operand.hbm [shape: f32[128,384], index: 1, kind: input, shape index: {}]   ;;  %s802_s2 = inlined_call_operand.hbm [shape: f32[128,128], index: 2, kind: output, shape index: {0}]   ;;  %s803_s3 = inlined_call_operand.hbm [shape: f32[128,128], index: 3, kind: output, shape index: {1}]   ;;  %s804_s4 = inlined_call_operand.hbm [shape: f32[128,128], index: 4, kind: output, shape index: {2}]  }
   0x1   :  { %11 = vsyncpa [#allocation6], 0 }
   0x2   :  { %12 = vsyncpa [#allocation4], 0 }
   0x3   :  { %13 = vsyncpa [#allocation9], 0  ;;  %s18_s17 = sshll.u32 %s800_s0, 4  ;;  %s611_s18 = smov [#allocation2]   ;;  %s19_s17 = int_to_ptr.hbm [resolvable:$true] %s18_s17 }
   0x4   :  { %s20_s19 = sshll.u32 %s611_s18, 4  ;;  %s31_s22 = sshll.u32 %s801_s1, 4  ;;  %s21_s19 = int_to_ptr.vmem [resolvable:$true] %s20_s19  ;;  %s32_s22 = int_to_ptr.hbm [resolvable:$true] %s31_s22 }
   0x5   :  { %s612_s23 = smov 128   ;;  %s613_s24 = smov 8  }
   0x6   :  { %26 = dma.hbm_to_vmem [thread:$0]  %s19_s17, 2048, %s21_s19, [#allocation3], %s612_s23, %s612_s23, %s613_s24  }
   0x7   :  { %s614_s25 = smov [#allocation5]   ;;  %s615_s27 = smov 384  }
   0x8   :  { %s33_s26 = sshll.u32 %s614_s25, 4  ;;  %s616_s0 = smov 24   ;;  %s34_s26 = int_to_ptr.vmem [resolvable:$true] %s33_s26 }
   0x9   :  { %39 = dma.hbm_to_vmem [thread:$0]  %s32_s22, 6144, %s34_s26, [#allocation6], %s615_s27, %s615_s27, %s616_s0  }
   0xa   :  { %603 = dma.done.wait [#allocation3], 2048  }
   0xb   :  { %604 = vsyncadd [#allocation3], 4294965248 }
   0xc   :  { %605 = dma.done.wait [#allocation6], 6144  }
   0xd   :  { %606 = vsyncadd [#allocation6], 4294961152  ;;  %v109_v0 = vld [vmem:[#allocation5 + $0x168] sm:$0xff]  ;;  %v654_v1 = vld [vmem:[#allocation5 + $0x178] sm:$0xff]  ;;  %s617_s1 = smov [#allocation7]   ;;  %s377_s5 = sshll.u32 %s802_s2, 4  ;;  %s378_s5 = int_to_ptr.hbm [resolvable:$true] %s377_s5 }
   0xe   :  { %v106_v2 = vld [vmem:[#allocation5 + $0x150] sm:$0xff]  ;;  %426 = vmatpush.msra.mxu3 %v109_v0  ;;  %242 = vmatpush.msra.mxu2 %v654_v1  ;;  %v657_v3 = vld [vmem:[#allocation5 + $0x160] sm:$0xff]  ;;  %v103_v4 = vld [vmem:[#allocation5 + $0x138] sm:$0xff]  ;;  %s375_s28 = sshll.u32 %s617_s1, 4  ;;  %s618_s6 = smov [#allocation8]   ;;  %s376_s28 = int_to_ptr.vmem [resolvable:$true] %s375_s28 }
   0xf   :  { %112 = vmatpush.msra.mxu0 %v109_v0  ;;  %v659_v5 = vld [vmem:[#allocation5 + $0x148] sm:$0xff]  ;;  %v661_v6 = vld [vmem:[#allocation5 + $0x170] sm:$0xff]  ;;  %v664_v7 = vld [vmem:[#allocation5 + $0x158] sm:$0xff]  ;;  %s388_s7 = sshll.u32 %s618_s6, 4  ;;  %s390_s10 = sshll.u32 %s803_s3, 4  ;;  %s389_s7 = int_to_ptr.vmem [resolvable:$true] %s388_s7  ;;  %s391_s10 = int_to_ptr.hbm [resolvable:$true] %s390_s10 }
  0x10   :  { %427 = vmatpush.msra.mxu3 %v106_v2  ;;  %243 = vmatpush.msra.mxu2 %v657_v3  ;;  %v100_v8 = vld [vmem:[#allocation5 + $0x120] sm:$0xff]  ;;  %v667_v9 = vld [vmem:[#allocation5 + $0x130] sm:$0xff]  ;;  %v97_v11 = vld [vmem:[#allocation5 + $0x108] sm:$0xff]  ;;  %s619_s11 = smov [#allocation10]   ;;  %s403_s15 = sshll.u32 %s804_s4, 4  ;;  %s404_s15 = int_to_ptr.hbm [resolvable:$true] %s403_s15 }
  0x11   :  { %177 = vmatpush.msra.mxu1 %v661_v6  ;;  %113 = vmatpush.msra.mxu0 %v106_v2  ;;  %v670_v10 = vld [vmem:[#allocation5 + $0x140] sm:$0xff]  ;;  %v673_v12 = vld [vmem:[#allocation5 + $0x118] sm:$0xff]  ;;  %v676_v13 = vld [vmem:[#allocation5 + $0x128] sm:$0xff]  ;;  %s401_s12 = sshll.u32 %s619_s11, 4  ;;  %s402_s12 = int_to_ptr.vmem [resolvable:$true] %s401_s12 }
  0x12   :  { %428 = vmatpush.msra.mxu3 %v103_v4  ;;  %244 = vmatpush.msra.mxu2 %v659_v5  ;;  %v94_v14 = vld [vmem:[#allocation5 + $0xf0] sm:$0xff]  ;;  %v679_v15 = vld [vmem:[#allocation5 + $0x100] sm:$0xff]  ;;  %v91_v17 = vld [vmem:[#allocation5 + $0xd8] sm:$0xff] }
  0x13   :  { %178 = vmatpush.msra.mxu1 %v664_v7  ;;  %114 = vmatpush.msra.mxu0 %v103_v4  ;;  %v682_v16 = vld [vmem:[#allocation5 + $0x110] sm:$0xff]  ;;  %v685_v18 = vld [vmem:[#allocation5 + $0xe8] sm:$0xff]  ;;  %v688_v19 = vld [vmem:[#allocation5 + $0xf8] sm:$0xff] }
  0x14   :  { %429 = vmatpush.msra.mxu3 %v100_v8  ;;  %245 = vmatpush.msra.mxu2 %v667_v9  ;;  %v88_v20 = vld [vmem:[#allocation5 + $0xc0] sm:$0xff]  ;;  %v691_v21 = vld [vmem:[#allocation5 + $0xd0] sm:$0xff]  ;;  %v85_v23 = vld [vmem:[#allocation5 + $0xa8] sm:$0xff] }
  0x15   :  { %179 = vmatpush.msra.mxu1 %v670_v10  ;;  %115 = vmatpush.msra.mxu0 %v100_v8  ;;  %v694_v22 = vld [vmem:[#allocation5 + $0xe0] sm:$0xff]  ;;  %v697_v24 = vld [vmem:[#allocation5 + $0xb8] sm:$0xff]  ;;  %v700_v25 = vld [vmem:[#allocation5 + $0xc8] sm:$0xff] }
  0x16   :  { %430 = vmatpush.msra.mxu3 %v97_v11  ;;  %246 = vmatpush.msra.mxu2 %v673_v12  ;;  %v82_v26 = vld [vmem:[#allocation5 + $0x90] sm:$0xff]  ;;  %v703_v27 = vld [vmem:[#allocation5 + $0xa0] sm:$0xff]  ;;  %v79_v29 = vld [vmem:[#allocation5 + $0x78] sm:$0xff] }
  0x17   :  { %180 = vmatpush.msra.mxu1 %v676_v13  ;;  %116 = vmatpush.msra.mxu0 %v97_v11  ;;  %v706_v28 = vld [vmem:[#allocation5 + $0xb0] sm:$0xff]  ;;  %v709_v30 = vld [vmem:[#allocation5 + $0x88] sm:$0xff]  ;;  %v712_v31 = vld [vmem:[#allocation5 + $0x98] sm:$0xff] }
  0x18   :  { %431 = vmatpush.msra.mxu3 %v94_v14  ;;  %247 = vmatpush.msra.mxu2 %v679_v15  ;;  %v76_v32 = vld [vmem:[#allocation5 + $0x60] sm:$0xff]  ;;  %v715_v33 = vld [vmem:[#allocation5 + $0x70] sm:$0xff]  ;;  %v73_v35 = vld [vmem:[#allocation5 + $0x48] sm:$0xff] }
  0x19   :  { %181 = vmatpush.msra.mxu1 %v682_v16  ;;  %117 = vmatpush.msra.mxu0 %v94_v14  ;;  %v718_v34 = vld [vmem:[#allocation5 + $0x80] sm:$0xff]  ;;  %v721_v36 = vld [vmem:[#allocation5 + $0x58] sm:$0xff]  ;;  %v77_v37 = vld [vmem:[#allocation5 + $0x68] sm:$0xff] }
  0x1a   :  { %432 = vmatpush.msra.mxu3 %v91_v17  ;;  %248 = vmatpush.msra.mxu2 %v685_v18  ;;  %v70_v38 = vld [vmem:[#allocation5 + $0x30] sm:$0xff]  ;;  %v725_v39 = vld [vmem:[#allocation5 + $0x40] sm:$0xff]  ;;  %v67_v41 = vld [vmem:[#allocation5 + $0x18] sm:$0xff] }
  0x1b   :  { %182 = vmatpush.msra.mxu1 %v688_v19  ;;  %118 = vmatpush.msra.mxu0 %v91_v17  ;;  %v74_v40 = vld [vmem:[#allocation5 + $0x50] sm:$0xff]  ;;  %v728_v42 = vld [vmem:[#allocation5 + $0x28] sm:$0xff]  ;;  %v71_v43 = vld [vmem:[#allocation5 + $0x38] sm:$0xff] }
  0x1c   :  { %433 = vmatpush.msra.mxu3 %v88_v20  ;;  %249 = vmatpush.msra.mxu2 %v691_v21  ;;  %v64_v44 = vld [vmem:[#allocation5] sm:$0xff]  ;;  %v731_v45 = vld [vmem:[#allocation5 + $0x10] sm:$0xff]  ;;  %v65_v49 = vld [vmem:[#allocation5 + $0x8] sm:$0xff] }
  0x1d   :  { %183 = vmatpush.msra.mxu1 %v694_v22  ;;  %119 = vmatpush.msra.mxu0 %v88_v20  ;;  %v734_v46 = vld [vmem:[#allocation2 + $0x60] sm:$0xff]  ;;  %v741_v50 = vld [vmem:[#allocation2 + $0x68] sm:$0xff]  ;;  %v748_v52 = vld [vmem:[#allocation2 + $0x70] sm:$0xff] }
  0x1e   :  { %434 = vmatpush.msra.mxu3 %v85_v23  ;;  %250 = vmatpush.msra.mxu2 %v697_v24  ;;  %v48_v47 = vld [vmem:[#allocation2] sm:$0xff]  ;;  %v49_v51 = vld [vmem:[#allocation2 + $0x8] sm:$0xff]  ;;  %v50_v53 = vld [vmem:[#allocation2 + $0x10] sm:$0xff] }
  0x1f   :  { %184 = vmatpush.msra.mxu1 %v700_v25  ;;  %120 = vmatpush.msra.mxu0 %v85_v23  ;;  %v68_v48 = vld [vmem:[#allocation5 + $0x20] sm:$0xff]  ;;  %v755_v54 = vld [vmem:[#allocation2 + $0x78] sm:$0xff]  ;;  %v53_v57 = vld [vmem:[#allocation2 + $0x28] sm:$0xff] }
  0x20   :  { %435 = vmatpush.msra.mxu3 %v82_v26  ;;  %251 = vmatpush.msra.mxu2 %v703_v27  ;;  %v51_v55 = vld [vmem:[#allocation2 + $0x18] sm:$0xff]  ;;  %v52_v56 = vld [vmem:[#allocation2 + $0x20] sm:$0xff]  ;;  %v54_v58 = vld [vmem:[#allocation2 + $0x30] sm:$0xff] }
  0x21   :  { %185 = vmatpush.msra.mxu1 %v706_v28  ;;  %121 = vmatpush.msra.mxu0 %v82_v26  ;;  %v55_v59 = vld [vmem:[#allocation2 + $0x38] sm:$0xff]  ;;  %v56_v60 = vld [vmem:[#allocation2 + $0x40] sm:$0xff]  ;;  %v57_v61 = vld [vmem:[#allocation2 + $0x48] sm:$0xff] }
  0x22   :  { %436 = vmatpush.msra.mxu3 %v79_v29  ;;  %252 = vmatpush.msra.mxu2 %v709_v30  ;;  %v58_v62 = vld [vmem:[#allocation2 + $0x50] sm:$0xff]  ;;  %v59_v63 = vld [vmem:[#allocation2 + $0x58] sm:$0xff] }
  0x23   :  { %186 = vmatpush.msra.mxu1 %v712_v31  ;;  %122 = vmatpush.msra.mxu0 %v79_v29 }
  0x24   :  { %437 = vmatpush.msra.mxu3 %v76_v32  ;;  %253 = vmatpush.msra.mxu2 %v715_v33 }
  0x25   :  { %187 = vmatpush.msra.mxu1 %v718_v34  ;;  %123 = vmatpush.msra.mxu0 %v76_v32 }
  0x26   :  { %438 = vmatpush.msra.mxu3 %v73_v35  ;;  %254 = vmatpush.msra.mxu2 %v721_v36 }
  0x27   :  { %188 = vmatpush.msra.mxu1 %v77_v37  ;;  %124 = vmatpush.msra.mxu0 %v73_v35 }
  0x28   :  { %439 = vmatpush.msra.mxu3 %v70_v38  ;;  %255 = vmatpush.msra.mxu2 %v725_v39 }
  0x29   :  { %189 = vmatpush.msra.mxu1 %v74_v40  ;;  %125 = vmatpush.msra.mxu0 %v70_v38 }
  0x2a   :  { %440 = vmatpush.msra.mxu3 %v67_v41  ;;  %256 = vmatpush.msra.mxu2 %v728_v42 }
  0x2b   :  { %190 = vmatpush.msra.mxu1 %v71_v43  ;;  %126 = vmatpush.msra.mxu0 %v67_v41 }
  0x2c   :  { %441 = vmatpush.msra.mxu3 %v64_v44  ;;  %257 = vmatpush.msra.mxu2 %v731_v45 }
  0x2d   :  { %164 = vmatmul.f32.vlgmr.msra.gmra.mxu3 %v734_v46  ;;  %258 = vmatmul.f32.vlgmr.msra.gmra.mxu2 %v48_v47 }
  0x2e   :  { %442 = vmatpush.msrb.mxu3 %v661_v6  ;;  %191 = vmatpush.msra.mxu1 %v68_v48 }
  0x2f   :  { %127 = vmatpush.msra.mxu0 %v64_v44 }
  0x30   :  { %443 = vmatpush.msrb.mxu3 %v664_v7  ;;  %128 = vmatmul.f32.vlgmr.msra.gmra.mxu0 %v48_v47 }
  0x31   :  { %192 = vmatpush.msra.mxu1 %v65_v49 }
  0x32   :  { %444 = vmatpush.msrb.mxu3 %v670_v10  ;;  %193 = vmatmul.f32.vlgmr.msra.gmra.mxu1 %v48_v47 }
  0x34   :  { %445 = vmatpush.msrb.mxu3 %v676_v13 }
  0x35   :  { %167 = vmatmul.f32.gmra.mxu3 %v741_v50  ;;  %261 = vmatmul.f32.gmra.mxu2 %v49_v51 }
  0x36   :  { %446 = vmatpush.msrb.mxu3 %v682_v16 }
  0x38   :  { %447 = vmatpush.msrb.mxu3 %v688_v19  ;;  %131 = vmatmul.f32.gmra.mxu0 %v49_v51 }
  0x3a   :  { %448 = vmatpush.msrb.mxu3 %v694_v22  ;;  %196 = vmatmul.f32.gmra.mxu1 %v49_v51 }
  0x3c   :  { %449 = vmatpush.msrb.mxu3 %v700_v25 }
  0x3d   :  { %170 = vmatmul.f32.gmra.mxu3 %v748_v52  ;;  %264 = vmatmul.f32.gmra.mxu2 %v50_v53 }
  0x3e   :  { %450 = vmatpush.msrb.mxu3 %v706_v28 }
  0x40   :  { %451 = vmatpush.msrb.mxu3 %v712_v31  ;;  %134 = vmatmul.f32.gmra.mxu0 %v50_v53 }
  0x42   :  { %452 = vmatpush.msrb.mxu3 %v718_v34  ;;  %199 = vmatmul.f32.gmra.mxu1 %v50_v53 }
  0x44   :  { %453 = vmatpush.msrb.mxu3 %v77_v37 }
  0x45   :  { %173 = vmatmul.f32.gmra.mxu3 %v755_v54  ;;  %267 = vmatmul.f32.gmra.mxu2 %v51_v55 }
  0x46   :  { %454 = vmatpush.msrb.mxu3 %v74_v40 }
  0x48   :  { %455 = vmatpush.msrb.mxu3 %v71_v43  ;;  %137 = vmatmul.f32.gmra.mxu0 %v51_v55 }
  0x4a   :  { %456 = vmatpush.msrb.mxu3 %v68_v48  ;;  %202 = vmatmul.f32.gmra.mxu1 %v51_v55 }
  0x4c   :  { %457 = vmatpush.msrb.mxu3 %v65_v49 }
  0x4d   :  { %229 = vmatmul.f32.vlgmr.msrb.gmra.mxu3 %v734_v46  ;;  %270 = vmatmul.f32.gmra.mxu2 %v52_v56 }
  0x4e   :  { %458 = vmatpush.msra.mxu3 %v654_v1 }
  0x50   :  { %459 = vmatpush.msra.mxu3 %v657_v3  ;;  %140 = vmatmul.f32.gmra.mxu0 %v52_v56 }
  0x52   :  { %460 = vmatpush.msra.mxu3 %v659_v5  ;;  %205 = vmatmul.f32.gmra.mxu1 %v52_v56 }
  0x54   :  { %461 = vmatpush.msra.mxu3 %v667_v9 }
  0x55   :  { %232 = vmatmul.f32.gmra.mxu3 %v741_v50  ;;  %273 = vmatmul.f32.gmra.mxu2 %v53_v57 }
  0x56   :  { %462 = vmatpush.msra.mxu3 %v673_v12 }
  0x58   :  { %463 = vmatpush.msra.mxu3 %v679_v15  ;;  %143 = vmatmul.f32.gmra.mxu0 %v53_v57 }
  0x5a   :  { %464 = vmatpush.msra.mxu3 %v685_v18  ;;  %208 = vmatmul.f32.gmra.mxu1 %v53_v57 }
  0x5c   :  { %465 = vmatpush.msra.mxu3 %v691_v21 }
  0x5d   :  { %235 = vmatmul.f32.gmra.mxu3 %v748_v52  ;;  %276 = vmatmul.f32.gmra.mxu2 %v54_v58 }
  0x5e   :  { %466 = vmatpush.msra.mxu3 %v697_v24 }
  0x60   :  { %467 = vmatpush.msra.mxu3 %v703_v27  ;;  %146 = vmatmul.f32.gmra.mxu0 %v54_v58 }
  0x62   :  { %468 = vmatpush.msra.mxu3 %v709_v30  ;;  %211 = vmatmul.f32.gmra.mxu1 %v54_v58 }
  0x64   :  { %469 = vmatpush.msra.mxu3 %v715_v33 }
  0x65   :  { %238 = vmatmul.f32.gmra.mxu3 %v755_v54  ;;  %279 = vmatmul.f32.gmra.mxu2 %v55_v59 }
  0x66   :  { %470 = vmatpush.msra.mxu3 %v721_v36 }
  0x68   :  { %471 = vmatpush.msra.mxu3 %v725_v39  ;;  %149 = vmatmul.f32.gmra.mxu0 %v55_v59 }
  0x6a   :  { %472 = vmatpush.msra.mxu3 %v728_v42  ;;  %214 = vmatmul.f32.gmra.mxu1 %v55_v59 }
  0x6c   :  { %473 = vmatpush.msra.mxu3 %v731_v45 }
  0x6d   :  { %282 = vmatmul.f32.gmra.mxu2 %v56_v60  ;;  %294 = vmatmul.f32.vlgmr.msra.gmra.mxu3 %v734_v46 }
  0x70   :  { %152 = vmatmul.f32.gmra.mxu0 %v56_v60 }
  0x72   :  { %217 = vmatmul.f32.gmra.mxu1 %v56_v60 }
  0x75   :  { %285 = vmatmul.f32.gmra.mxu2 %v57_v61  ;;  %297 = vmatmul.f32.gmra.mxu3 %v741_v50 }
  0x78   :  { %155 = vmatmul.f32.gmra.mxu0 %v57_v61 }
  0x7a   :  { %220 = vmatmul.f32.gmra.mxu1 %v57_v61 }
  0x7d   :  { %288 = vmatmul.f32.gmra.mxu2 %v58_v62  ;;  %300 = vmatmul.f32.gmra.mxu3 %v748_v52 }
  0x80   :  { %158 = vmatmul.f32.gmra.mxu0 %v58_v62 }
  0x82   :  { %223 = vmatmul.f32.gmra.mxu1 %v58_v62 }
  0x85   :  { %291 = vmatmul.f32.gmra.mxu2 %v59_v63  ;;  %303 = vmatmul.f32.gmra.mxu3 %v755_v54 }
  0x88   :  { %161 = vmatmul.f32.gmra.mxu0 %v59_v63 }
  0x8a   :  { %226 = vmatmul.f32.gmra.mxu1 %v59_v63 }
  0xad   :  { %v129_v0 = vpop.f32.mrf.mxu0 }
  0xae   :  { %v307_v1 = vmul.f32 0.70710677, %v129_v0 }
  0xaf   :  { %v194_v2 = vpop.f32.mrf.mxu1 }
  0xb0   :  { %323 = vst [vmem:[#allocation7] sm:$0xff] %v307_v1  ;;  %v165_v3 = vpop.f32.mrf.mxu3  ;;  %v259_v4 = vpop.f32.mrf.mxu2 }
  0xb1   :  { %339 = vst [vmem:[#allocation8] sm:$0xff] %v194_v2  ;;  %v319_v5 = vmul.f32 0.70710677, %v165_v3 }
  0xb2   :  { %355 = vst [vmem:[#allocation10] sm:$0xff] %v259_v4 }
  0xb3   :  { %335 = vst [vmem:[#allocation7 + $0x60] sm:$0xff] %v319_v5 }
  0xb5   :  { %v132_v6 = vpop.f32.mrf.mxu0 }
  0xb6   :  { %v308_v7 = vmul.f32 0.70710677, %v132_v6 }
  0xb7   :  { %v197_v8 = vpop.f32.mrf.mxu1 }
  0xb8   :  { %324 = vst [vmem:[#allocation7 + $0x8] sm:$0xff] %v308_v7  ;;  %v168_v9 = vpop.f32.mrf.mxu3  ;;  %v262_v10 = vpop.f32.mrf.mxu2 }
  0xb9   :  { %340 = vst [vmem:[#allocation8 + $0x8] sm:$0xff] %v197_v8  ;;  %v320_v11 = vmul.f32 0.70710677, %v168_v9 }
  0xba   :  { %356 = vst [vmem:[#allocation10 + $0x8] sm:$0xff] %v262_v10 }
  0xbb   :  { %336 = vst [vmem:[#allocation7 + $0x68] sm:$0xff] %v320_v11 }
  0xbd   :  { %v135_v12 = vpop.f32.mrf.mxu0 }
  0xbe   :  { %v309_v13 = vmul.f32 0.70710677, %v135_v12 }
  0xbf   :  { %v200_v14 = vpop.f32.mrf.mxu1 }
  0xc0   :  { %325 = vst [vmem:[#allocation7 + $0x10] sm:$0xff] %v309_v13  ;;  %v171_v15 = vpop.f32.mrf.mxu3  ;;  %v265_v16 = vpop.f32.mrf.mxu2 }
  0xc1   :  { %341 = vst [vmem:[#allocation8 + $0x10] sm:$0xff] %v200_v14  ;;  %v321_v17 = vmul.f32 0.70710677, %v171_v15 }
  0xc2   :  { %357 = vst [vmem:[#allocation10 + $0x10] sm:$0xff] %v265_v16 }
  0xc3   :  { %337 = vst [vmem:[#allocation7 + $0x70] sm:$0xff] %v321_v17 }
  0xc5   :  { %v138_v18 = vpop.f32.mrf.mxu0 }
  0xc6   :  { %v310_v19 = vmul.f32 0.70710677, %v138_v18 }
  0xc7   :  { %v203_v20 = vpop.f32.mrf.mxu1 }
  0xc8   :  { %326 = vst [vmem:[#allocation7 + $0x18] sm:$0xff] %v310_v19  ;;  %v174_v21 = vpop.f32.mrf.mxu3  ;;  %v268_v22 = vpop.f32.mrf.mxu2 }
  0xc9   :  { %342 = vst [vmem:[#allocation8 + $0x18] sm:$0xff] %v203_v20  ;;  %v322_v23 = vmul.f32 0.70710677, %v174_v21 }
  0xca   :  { %358 = vst [vmem:[#allocation10 + $0x18] sm:$0xff] %v268_v22 }
  0xcb   :  { %338 = vst [vmem:[#allocation7 + $0x78] sm:$0xff] %v322_v23 }
  0xcd   :  { %v141_v24 = vpop.f32.mrf.mxu0 }
  0xce   :  { %v311_v25 = vmul.f32 0.70710677, %v141_v24 }
  0xcf   :  { %v206_v26 = vpop.f32.mrf.mxu1 }
  0xd0   :  { %327 = vst [vmem:[#allocation7 + $0x20] sm:$0xff] %v311_v25  ;;  %v230_v27 = vpop.f32.mrf.mxu3  ;;  %v271_v28 = vpop.f32.mrf.mxu2 }
  0xd1   :  { %343 = vst [vmem:[#allocation8 + $0x20] sm:$0xff] %v206_v26 }
  0xd2   :  { %351 = vst [vmem:[#allocation8 + $0x60] sm:$0xff] %v230_v27 }
  0xd3   :  { %359 = vst [vmem:[#allocation10 + $0x20] sm:$0xff] %v271_v28 }
  0xd5   :  { %v144_v29 = vpop.f32.mrf.mxu0 }
  0xd6   :  { %v312_v30 = vmul.f32 0.70710677, %v144_v29 }
  0xd7   :  { %v209_v31 = vpop.f32.mrf.mxu1 }
  0xd8   :  { %328 = vst [vmem:[#allocation7 + $0x28] sm:$0xff] %v312_v30  ;;  %v233_v32 = vpop.f32.mrf.mxu3  ;;  %v274_v33 = vpop.f32.mrf.mxu2 }
  0xd9   :  { %344 = vst [vmem:[#allocation8 + $0x28] sm:$0xff] %v209_v31 }
  0xda   :  { %352 = vst [vmem:[#allocation8 + $0x68] sm:$0xff] %v233_v32 }
  0xdb   :  { %360 = vst [vmem:[#allocation10 + $0x28] sm:$0xff] %v274_v33 }
  0xdd   :  { %v147_v34 = vpop.f32.mrf.mxu0 }
  0xde   :  { %v313_v35 = vmul.f32 0.70710677, %v147_v34 }
  0xdf   :  { %v212_v36 = vpop.f32.mrf.mxu1 }
  0xe0   :  { %329 = vst [vmem:[#allocation7 + $0x30] sm:$0xff] %v313_v35  ;;  %v236_v37 = vpop.f32.mrf.mxu3  ;;  %v277_v38 = vpop.f32.mrf.mxu2 }
  0xe1   :  { %345 = vst [vmem:[#allocation8 + $0x30] sm:$0xff] %v212_v36 }
  0xe2   :  { %353 = vst [vmem:[#allocation8 + $0x70] sm:$0xff] %v236_v37 }
  0xe3   :  { %361 = vst [vmem:[#allocation10 + $0x30] sm:$0xff] %v277_v38 }
  0xe5   :  { %v150_v39 = vpop.f32.mrf.mxu0 }
  0xe6   :  { %v314_v40 = vmul.f32 0.70710677, %v150_v39 }
  0xe7   :  { %v215_v41 = vpop.f32.mrf.mxu1 }
  0xe8   :  { %330 = vst [vmem:[#allocation7 + $0x38] sm:$0xff] %v314_v40  ;;  %v239_v42 = vpop.f32.mrf.mxu3  ;;  %v280_v43 = vpop.f32.mrf.mxu2 }
  0xe9   :  { %346 = vst [vmem:[#allocation8 + $0x38] sm:$0xff] %v215_v41 }
  0xea   :  { %354 = vst [vmem:[#allocation8 + $0x78] sm:$0xff] %v239_v42 }
  0xeb   :  { %362 = vst [vmem:[#allocation10 + $0x38] sm:$0xff] %v280_v43 }
  0xed   :  { %v153_v44 = vpop.f32.mrf.mxu0 }
  0xee   :  { %v315_v45 = vmul.f32 0.70710677, %v153_v44 }
  0xef   :  { %v218_v46 = vpop.f32.mrf.mxu1 }
  0xf0   :  { %331 = vst [vmem:[#allocation7 + $0x40] sm:$0xff] %v315_v45  ;;  %v283_v47 = vpop.f32.mrf.mxu2  ;;  %v295_v48 = vpop.f32.mrf.mxu3 }
  0xf1   :  { %347 = vst [vmem:[#allocation8 + $0x40] sm:$0xff] %v218_v46 }
  0xf2   :  { %363 = vst [vmem:[#allocation10 + $0x40] sm:$0xff] %v283_v47 }
  0xf3   :  { %367 = vst [vmem:[#allocation10 + $0x60] sm:$0xff] %v295_v48 }
  0xf5   :  { %v156_v49 = vpop.f32.mrf.mxu0 }
  0xf6   :  { %v316_v50 = vmul.f32 0.70710677, %v156_v49 }
  0xf7   :  { %v221_v51 = vpop.f32.mrf.mxu1 }
  0xf8   :  { %332 = vst [vmem:[#allocation7 + $0x48] sm:$0xff] %v316_v50  ;;  %v286_v52 = vpop.f32.mrf.mxu2  ;;  %v298_v53 = vpop.f32.mrf.mxu3 }
  0xf9   :  { %348 = vst [vmem:[#allocation8 + $0x48] sm:$0xff] %v221_v51 }
  0xfa   :  { %364 = vst [vmem:[#allocation10 + $0x48] sm:$0xff] %v286_v52 }
  0xfb   :  { %368 = vst [vmem:[#allocation10 + $0x68] sm:$0xff] %v298_v53 }
  0xfd   :  { %v159_v54 = vpop.f32.mrf.mxu0 }
  0xfe   :  { %v317_v55 = vmul.f32 0.70710677, %v159_v54 }
  0xff   :  { %v224_v56 = vpop.f32.mrf.mxu1 }
 0x100   :  { %333 = vst [vmem:[#allocation7 + $0x50] sm:$0xff] %v317_v55  ;;  %v289_v57 = vpop.f32.mrf.mxu2  ;;  %v301_v58 = vpop.f32.mrf.mxu3 }
 0x101   :  { %349 = vst [vmem:[#allocation8 + $0x50] sm:$0xff] %v224_v56 }
 0x102   :  { %365 = vst [vmem:[#allocation10 + $0x50] sm:$0xff] %v289_v57 }
 0x103   :  { %369 = vst [vmem:[#allocation10 + $0x70] sm:$0xff] %v301_v58 }
 0x105   :  { %v162_v59 = vpop.f32.mrf.mxu0 }
 0x106   :  { %v318_v60 = vmul.f32 0.70710677, %v162_v59 }
 0x107   :  { %v227_v61 = vpop.f32.mrf.mxu1 }
 0x108   :  { %334 = vst [vmem:[#allocation7 + $0x58] sm:$0xff] %v318_v60  ;;  %v292_v62 = vpop.f32.mrf.mxu2  ;;  %v304_v63 = vpop.f32.mrf.mxu3 }
 0x109   :  { %350 = vst [vmem:[#allocation8 + $0x58] sm:$0xff] %v227_v61  ;;  %383 = dma.vmem_to_hbm [thread:$0]  %s376_s28, 2048, %s378_s5, [#allocation4], %s612_s23, %s612_s23, %s613_s24  }
 0x10a   :  { %366 = vst [vmem:[#allocation10 + $0x58] sm:$0xff] %v292_v62  ;;  %396 = dma.vmem_to_hbm [thread:$0]  %s389_s7, 2048, %s391_s10, [#allocation9], %s612_s23, %s612_s23, %s613_s24  }
 0x10b   :  { %370 = vst [vmem:[#allocation10 + $0x78] sm:$0xff] %v304_v63 }
 0x10c   :  { %409 = dma.vmem_to_hbm [thread:$0]  %s402_s12, 2048, %s404_s15, [#allocation9], %s612_s23, %s612_s23, %s613_s24  }
 0x10d   :  { %607 = dma.done.wait [#allocation4], 2048  }
 0x10e   :  { %608 = vsyncadd [#allocation4], 4294965248 }
 0x10f   :  { %609 = dma.done.wait [#allocation9], 4096  }
 0x110   :  { %610 = vsyncadd [#allocation9], 4294963200 }
 0x111   :  { %422 = vsyncpa [#allocation3], 1 }
 0x112   :  { %423 = vsyncpa [#allocation6], 1 }
 0x113   :  { %424 = vsyncpa [#allocation4], 1 }
 0x114   :  { %425 = vsyncpa [#allocation9], 1 }

</bundles_post_ra>
